<compile_context>
chip_gen: v5e
topology: v5e:2x2
jax: 0.10.0
libtpu: 0.0.40
codegen_flags: <defaults>
</compile_context>

<pallas_src>
import math
import functools

import jax
import jax.numpy as jnp
from jax import lax
from jax.experimental import pallas as pl
from jax.experimental.pallas import tpu as pltpu


_MASK_VALUE = -1e30   # large finite negative: bf16/f32 safe, no -inf NaN traps
_LN_EPS = 1e-5


# ---------------- kernel-side helpers (traced into the kernels) ----------------

def _layernorm(x, w, b, eps=_LN_EPS):
    mu = jnp.mean(x, axis=-1, keepdims=True)
    var = jnp.mean((x - mu) ** 2, axis=-1, keepdims=True)
    return (x - mu) * lax.rsqrt(var + eps) * w + b


def _new_gelu(x):
    c = math.sqrt(2.0 / math.pi)
    return 0.5 * x * (1.0 + jnp.tanh(c * (x + 0.044715 * x * x * x)))


# ------------------------- pass 1: ln_1 + qkv projection ------------------------

def qkv_kernel(x_ref, ln1_w_ref, ln1_b_ref, w_attn_ref, b_attn_ref,
               q_ref, k_ref, v_ref):
    x = x_ref[0]                                     # (tr, C) f32
    C = x.shape[-1]
    h = _layernorm(x, ln1_w_ref[0], ln1_b_ref[0])
    w = w_attn_ref[...]                              # (C, 3C), compute dtype
    qkv = jnp.dot(h.astype(w.dtype), w,
                  preferred_element_type=jnp.float32) + b_attn_ref[0]   # (tr, 3C) f32
    # Lane-dense, full-width stores.  1/sqrt(hd) is already folded into the q
    # columns of w_attn / b_attn host-side -> pure slice + cast here.
    q_ref[0] = qkv[:, :C].astype(q_ref.dtype)
    k_ref[0] = qkv[:, C:2 * C].astype(k_ref.dtype)
    v_ref[0] = qkv[:, 2 * C:].astype(v_ref.dtype)


# ------ pass 2: flash attention + proj + residual + ln_2 + MLP + residual -------

def attn_mlp_kernel(x_ref, q_ref, k_ref, v_ref,
                    w_proj_ref, b_proj_ref,
                    ln2_w_ref, ln2_b_ref,
                    w_fc_ref, b_fc_ref,
                    w_fcp_ref, b_fcp_ref,
                    o_ref,
                    m_ref, l_ref, acc_ref,
                    *, n_head, approx_recip, compute_dtype):
    tq = q_ref.shape[1]
    tkv = k_ref.shape[1]
    C = q_ref.shape[2]
    hd = C // n_head

    j = pl.program_id(2)
    nkv = pl.num_programs(2)
    q0 = pl.program_id(1) * tq
    kv0 = j * tkv

    @pl.when(j == 0)
    def _init():
        m_ref[...] = jnp.full_like(m_ref, _MASK_VALUE)
        l_ref[...] = jnp.zeros_like(l_ref)
        acc_ref[...] = jnp.zeros_like(acc_ref)

    # Causal tile skip: this KV tile contributes only if its first column is
    # <= the last query row of this tile (index_map is clamped host-side so
    # skipped steps also issue no new DMA).
    @pl.when(kv0 <= q0 + tq - 1)
    def _attend():
        q = q_ref[0]                                   # (tq, C)  compute dtype, pre-scaled
        k = k_ref[0]                                   # (tkv, C)
        v = v_ref[0]
        # Head-major views; the split/transpose stays inside VMEM (q/k/v are
        # stored lane-dense in HBM).
        qh = q.reshape(tq, n_head, hd).swapaxes(0, 1)      # (H, tq, hd)
        kh = k.reshape(tkv, n_head, hd).swapaxes(0, 1)     # (H, tkv, hd)
        vh = v.reshape(tkv, n_head, hd).swapaxes(0, 1)     # (H, tkv, hd)

        s = jnp.einsum('hqd,hkd->hqk', qh, kh,
                       preferred_element_type=jnp.float32)  # (H, tq, tkv) f32

        row = q0 + lax.broadcasted_iota(jnp.int32, (tq, tkv), 0)
        col = kv0 + lax.broadcasted_iota(jnp.int32, (tq, tkv), 1)
        s = jnp.where((row >= col)[None], s, _MASK_VALUE)

        # Online softmax update (f32 stats, bf16/f32 operands on the MXU).
        m_prev = m_ref[...]                                          # (H, tq, 1)
        m_new = jnp.maximum(m_prev, jnp.max(s, axis=-1, keepdims=True))
        alpha = jnp.exp(m_prev - m_new)
        p = jnp.exp(s - m_new)                                       # (H, tq, tkv)
        l_ref[...] = alpha * l_ref[...] + jnp.sum(p, axis=-1, keepdims=True)
        acc_ref[...] = alpha * acc_ref[...] + jnp.einsum(
            'hqk,hkd->hqd', p.astype(compute_dtype), vh,
            preferred_element_type=jnp.float32)                      # (H, tq, hd)
        m_ref[...] = m_new

    @pl.when(j == nkv - 1)
    def _finalize():
        cd = compute_dtype
        x = x_ref[0]                                                 # (tq, C) f32 residual

        y = acc_ref[...] * pl.reciprocal(l_ref[...], approx=approx_recip)
        # Merge heads back to (tq, C): the projection is ONE C-deep MXU matmul
        # (head-sum fused into the contraction, no (H, tq, C) intermediate).
        y = y.swapaxes(0, 1).reshape(tq, C)
        y = jnp.dot(y.astype(cd), w_proj_ref[...],
                    preferred_element_type=jnp.float32) + b_proj_ref[0]

        x1 = x + y                                                   # residual 1 (f32)

        # MLP branch; the (tq, 4C) GELU intermediate runs in the compute dtype
        # (pass compute_dtype=f32 on v5e, which has no bf16 VPU/EUP).
        h2 = _layernorm(x1, ln2_w_ref[0], ln2_b_ref[0])
        f = jnp.dot(h2.astype(cd), w_fc_ref[...],
                    preferred_element_type=jnp.float32) + b_fc_ref[0]
        f = _new_gelu(f.astype(cd))
        f = jnp.dot(f.astype(cd), w_fcp_ref[...],
                    preferred_element_type=jnp.float32) + b_fcp_ref[0]
        # TODO(synk): attn/resid/mlp dropout are identity (inference semantics).
        o_ref[0] = (x1 + f).astype(o_ref.dtype)                      # residual 2


# ------------------------------ host-side wrapper -------------------------------

def _vmem_limit_bytes():
    # Raise the scoped-VMEM limit toward physical capacity (defaults are 16-32 MiB).
    try:
        cap = pltpu.get_tpu_info().vmem_capacity_bytes
        return int(cap) * 3 // 4
    except Exception:
        return 64 * 1024 * 1024


def _weight_spec(shape, single_buffer):
    # Full-array block, same for every grid step (weights / biases).
    idx = lambda *_: (0,) * len(shape)
    if single_buffer:
        # Constant index map never re-DMAs; single-buffer it to halve its VMEM.
        return pl.BlockSpec(shape, idx, pipeline_mode=pl.Buffered(1))
    return pl.BlockSpec(shape, idx)


def _run_block(x, params, n_head, cd, tr, tq, tkv, single_buffer_weights):
    B, T, C = x.shape
    hd = C // n_head
    nq, nkv = T // tq, T // tkv
    cd_bytes = jnp.dtype(cd).itemsize
    vmem_limit = _vmem_limit_bytes()
    wspec = functools.partial(_weight_spec, single_buffer=single_buffer_weights)

    # Fold 1/sqrt(hd) into the q columns of the qkv projection (host-side).
    scale = 1.0 / math.sqrt(hd)
    col_scale = jnp.concatenate(
        [jnp.full((C,), scale, jnp.float32), jnp.ones((2 * C,), jnp.float32)])
    w_attn = (params["w_attn"] * col_scale).astype(cd)
    b_attn = params["b_attn"] * col_scale            # bias stays f32 (added post-matmul)

    # ---- pass 1: ln_1 + fused qkv projection, lane-dense (B, T, C) outputs ----
    cost1 = pl.CostEstimate(
        flops=2 * B * T * C * 3 * C + 10 * B * T * C,
        transcendentals=B * T,
        bytes_accessed=4 * B * T * C + (C * 3 * C + 3 * C) * cd_bytes
                       + 3 * B * T * C * cd_bytes)
    q, k, v = pl.pallas_call(
        qkv_kernel,
        grid=(B, T // tr),
        in_specs=[
            pl.BlockSpec((1, tr, C), lambda b, i: (b, i, 0)),          # x row tile
            wspec((1, C)), wspec((1, C)),                              # ln_1 w, b
            wspec((C, 3 * C)), wspec((1, 3 * C)),                      # c_attn W, b (scaled)
        ],
        out_specs=[pl.BlockSpec((1, tr, C), lambda b, i: (b, i, 0))] * 3,
        out_shape=[jax.ShapeDtypeStruct((B, T, C), cd)] * 3,
        compiler_params=pltpu.CompilerParams(
            dimension_semantics=("parallel", "parallel"),
            vmem_limit_bytes=vmem_limit),
        cost_estimate=cost1,
    )(x, params["ln1_w"], params["ln1_b"], w_attn, b_attn)

    # ---- pass 2: flash attention + proj + residual + ln_2 + MLP + residual ----
    def kv_index(b, i, j):
        # Clamp KV block index to the causal limit for this q tile so the
        # skipped (fully masked) grid steps re-use the previous block (no DMA).
        jmax = ((i + 1) * tq - 1) // tkv
        return (b, jnp.minimum(j, jmax), 0)

    cost2 = pl.CostEstimate(
        flops=4 * B * T * T * C + 18 * B * T * C * C + 30 * B * T * C,
        transcendentals=B * n_head * T * T + B * T * 4 * C + 2 * B * T,
        bytes_accessed=(2 * 4 * B * T * C                      # x in + out (f32)
                        + B * T * C * cd_bytes                 # q
                        + 2 * nq * B * T * C * cd_bytes        # k, v re-read per q tile
                        + (C * C + 8 * C * C) * cd_bytes))     # proj + mlp weights

    out = pl.pallas_call(
        functools.partial(attn_mlp_kernel, n_head=n_head,
                          approx_recip=(jnp.dtype(cd) != jnp.dtype(jnp.float32)),
                          compute_dtype=cd),
        grid=(B, nq, nkv),
        in_specs=[
            pl.BlockSpec((1, tq, C), lambda b, i, j: (b, i, 0)),       # x (residual tile)
            pl.BlockSpec((1, tq, C), lambda b, i, j: (b, i, 0)),       # q tile (pre-scaled)
            pl.BlockSpec((1, tkv, C), kv_index),                       # k tile
            pl.BlockSpec((1, tkv, C), kv_index),                       # v tile
            wspec((C, C)), wspec((1, C)),                              # c_proj W, b
            wspec((1, C)), wspec((1, C)),                              # ln_2 w, b
            wspec((C, 4 * C)), wspec((1, 4 * C)),                      # mlp.c_fc W, b
            wspec((4 * C, C)), wspec((1, C)),                          # mlp.c_proj W, b
        ],
        out_specs=pl.BlockSpec((1, tq, C), lambda b, i, j: (b, i, 0)),
        out_shape=jax.ShapeDtypeStruct((B, T, C), x.dtype),
        scratch_shapes=[
            pltpu.VMEM((n_head, tq, 1), jnp.float32),    # m (running max)
            pltpu.VMEM((n_head, tq, 1), jnp.float32),    # l (running denom)
            pltpu.VMEM((n_head, tq, hd), jnp.float32),   # acc
        ],
        compiler_params=pltpu.CompilerParams(
            dimension_semantics=("parallel", "parallel", "arbitrary"),
            vmem_limit_bytes=vmem_limit),
        cost_estimate=cost2,
    )(x, q, k, v,
      params["w_proj"].astype(cd), params["b_proj"],
      params["ln2_w"], params["ln2_b"],
      params["w_fc"].astype(cd), params["b_fc"],
      params["w_fcp"].astype(cd), params["b_fcp"])
    return out


def transformer_block(x, params, n_head, *, compute_dtype=jnp.bfloat16,
                      row_tile=256, q_tile=128, kv_tile=256):
    """minGPT Block forward.  x: (B, T, C) float32."""
    B, T, C = x.shape
    assert C % n_head == 0
    tr = min(row_tile, T)
    tq = min(q_tile, T)
    tkv = min(kv_tile, T)
    assert T % tr == 0 and T % tq == 0 and T % tkv == 0, \
        "T must be divisible by the row/query/kv tiles"
    cd = jnp.dtype(compute_dtype)
    try:
        return _run_block(x, params, n_head, cd, tr, tq, tkv,
                          single_buffer_weights=True)
    except Exception:
        # TODO(synk): pl.Buffered(1) single-buffered weights unsupported on this
        # JAX version -> fall back to default double-buffered weight blocks.
        return _run_block(x, params, n_head, cd, tr, tq, tkv,
                          single_buffer_weights=False)


# ----------------------------- pure-JAX reference -------------------------------

def reference_block(x, p, n_head):
    B, T, C = x.shape
    hd = C // n_head

    def ln(v, w, b):
        mu = jnp.mean(v, -1, keepdims=True)
        var = jnp.mean((v - mu) ** 2, -1, keepdims=True)
        return (v - mu) / jnp.sqrt(var + 1e-5) * w[0] + b[0]

    h = ln(x, p["ln1_w"], p["ln1_b"])
    qkv = h @ p["w_attn"] + p["b_attn"][0]
    q, k, v = jnp.split(qkv, 3, axis=-1)
    q = q.reshape(B, T, n_head, hd).transpose(0, 2, 1, 3)
    k = k.reshape(B, T, n_head, hd).transpose(0, 2, 1, 3)
    v = v.reshape(B, T, n_head, hd).transpose(0, 2, 1, 3)
    att = (q @ jnp.swapaxes(k, -2, -1)) / math.sqrt(hd)
    mask = jnp.tril(jnp.ones((T, T), bool))
    att = jnp.where(mask, att, -jnp.inf)
    att = jax.nn.softmax(att, axis=-1)
    y = (att @ v).transpose(0, 2, 1, 3).reshape(B, T, C)
    y = y @ p["w_proj"] + p["b_proj"][0]
    x1 = x + y

    h2 = ln(x1, p["ln2_w"], p["ln2_b"])
    f = h2 @ p["w_fc"] + p["b_fc"][0]
    f = 0.5 * f * (1.0 + jnp.tanh(math.sqrt(2.0 / math.pi) * (f + 0.044715 * f ** 3)))
    f = f @ p["w_fcp"] + p["b_fcp"][0]
    return x1 + f


# ------------------------------------ main ---------------------------------------

if __name__ == "__main__":
    B, T, C, n_head = 2, 8, 32, 4   # block_size = T

    key = jax.random.PRNGKey(0)
    ks = jax.random.split(key, 8)

    def rnd(k, shape, scale=0.02):
        return (scale * jax.random.normal(k, shape)).astype(jnp.float32)

    params = dict(
        ln1_w=jnp.ones((1, C), jnp.float32),
        ln1_b=jnp.zeros((1, C), jnp.float32),
        w_attn=rnd(ks[0], (C, 3 * C)),
        b_attn=jnp.zeros((1, 3 * C), jnp.float32),
        w_proj=rnd(ks[1], (C, C)),
        b_proj=jnp.zeros((1, C), jnp.float32),
        ln2_w=jnp.ones((1, C), jnp.float32),
        ln2_b=jnp.zeros((1, C), jnp.float32),
        w_fc=rnd(ks[2], (C, 4 * C)),
        b_fc=jnp.zeros((1, 4 * C), jnp.float32),
        w_fcp=rnd(ks[3], (4 * C, C)),
        b_fcp=jnp.zeros((1, C), jnp.float32),
    )

    x = jax.random.normal(ks[4], (B, T, C), jnp.float32)

    ref = reference_block(x, params, n_head)

    # Exact path (f32 matmul operands) -- must match the reference tightly.
    out_f32 = jax.block_until_ready(
        transformer_block(x, params, n_head, compute_dtype=jnp.float32))
    assert out_f32.shape == (B, T, C)
    assert jnp.allclose(out_f32, ref, atol=1e-4, rtol=1e-4), "f32 mismatch vs reference"

    # Default path: bf16 matmul operands / f32 accumulation (MXU fast path).
    out_bf16 = jax.block_until_ready(transformer_block(x, params, n_head))
    assert jnp.allclose(out_bf16, ref, atol=2e-2, rtol=2e-2), "bf16 mismatch vs reference"

    print("KERNEL_OK")
</pallas_src>

<mosaic_0001>
module attributes {stable_mosaic.version = 11 : i64} {
  func.func @qkv_kernel(%arg0: i32, %arg1: i32, %arg2: memref<1x8x32xf32, #tpu.memory_space<vmem>>, %arg3: memref<1x32xf32, #tpu.memory_space<vmem>>, %arg4: memref<1x32xf32, #tpu.memory_space<vmem>>, %arg5: memref<32x96xf32, #tpu.memory_space<vmem>>, %arg6: memref<1x96xf32, #tpu.memory_space<vmem>>, %arg7: memref<1x8x32xf32, #tpu.memory_space<vmem>>, %arg8: memref<1x8x32xf32, #tpu.memory_space<vmem>>, %arg9: memref<1x8x32xf32, #tpu.memory_space<vmem>>) attributes {dimension_semantics = [#tpu.dimension_semantics<parallel>, #tpu.dimension_semantics<parallel>], iteration_bounds = array<i64: 2, 1>, scalar_prefetch = 0 : i64, scratch_operands = 0 : i64, tpu.core_type = #tpu.core_type<tc>, window_params = [{transform_indices = @transform_0, window_bounds = array<i64: 1, 8, 32>}, {pipeline_mode = #tpu.pipeline_mode<synchronous>, transform_indices = @transform_1, window_bounds = array<i64: 1, 32>}, {pipeline_mode = #tpu.pipeline_mode<synchronous>, transform_indices = @transform_2, window_bounds = array<i64: 1, 32>}, {pipeline_mode = #tpu.pipeline_mode<synchronous>, transform_indices = @transform_3, window_bounds = array<i64: 32, 96>}, {pipeline_mode = #tpu.pipeline_mode<synchronous>, transform_indices = @transform_4, window_bounds = array<i64: 1, 96>}, {transform_indices = @transform_5, window_bounds = array<i64: 1, 8, 32>}, {transform_indices = @transform_6, window_bounds = array<i64: 1, 8, 32>}, {transform_indices = @transform_7, window_bounds = array<i64: 1, 8, 32>}]} {
    %c0 = arith.constant 0 : index
    %c0_0 = arith.constant 0 : index
    %c0_1 = arith.constant 0 : index
    %0 = vector.load %arg2[%c0, %c0_0, %c0_1] : memref<1x8x32xf32, #tpu.memory_space<vmem>>, vector<1x8x32xf32>
    %1 = vector.shape_cast %0 : vector<1x8x32xf32> to vector<8x32xf32>
    %c0_2 = arith.constant 0 : index
    %c0_3 = arith.constant 0 : index
    %2 = vector.load %arg3[%c0_2, %c0_3] : memref<1x32xf32, #tpu.memory_space<vmem>>, vector<1x32xf32>
    %3 = vector.shape_cast %2 : vector<1x32xf32> to vector<32xf32>
    %c0_4 = arith.constant 0 : index
    %c0_5 = arith.constant 0 : index
    %4 = vector.load %arg4[%c0_4, %c0_5] : memref<1x32xf32, #tpu.memory_space<vmem>>, vector<1x32xf32>
    %5 = vector.shape_cast %4 : vector<1x32xf32> to vector<32xf32>
    %cst = arith.constant dense<0.000000e+00> : vector<8xf32>
    %6 = vector.multi_reduction <add>, %1, %cst [1] : vector<8x32xf32> to vector<8xf32>
    %7 = vector.shape_cast %6 : vector<8xf32> to vector<8x1xf32>
    %cst_6 = arith.constant 3.200000e+01 : f32
    %8 = vector.broadcast %cst_6 : f32 to vector<8x1xf32>
    %9 = arith.divf %7, %8 : vector<8x1xf32>
    %10 = vector.broadcast %9 : vector<8x1xf32> to vector<8x32xf32>
    %11 = arith.subf %1, %10 : vector<8x32xf32>
    %12 = arith.mulf %11, %11 : vector<8x32xf32>
    %cst_7 = arith.constant dense<0.000000e+00> : vector<8xf32>
    %13 = vector.multi_reduction <add>, %12, %cst_7 [1] : vector<8x32xf32> to vector<8xf32>
    %14 = vector.shape_cast %13 : vector<8xf32> to vector<8x1xf32>
    %cst_8 = arith.constant 3.200000e+01 : f32
    %15 = vector.broadcast %cst_8 : f32 to vector<8x1xf32>
    %16 = arith.divf %14, %15 : vector<8x1xf32>
    %17 = vector.broadcast %9 : vector<8x1xf32> to vector<8x32xf32>
    %18 = arith.subf %1, %17 : vector<8x32xf32>
    %cst_9 = arith.constant 9.99999974E-6 : f32
    %19 = vector.broadcast %cst_9 : f32 to vector<8x1xf32>
    %20 = arith.addf %16, %19 : vector<8x1xf32>
    %21 = math.rsqrt %20 : vector<8x1xf32>
    %22 = vector.broadcast %21 : vector<8x1xf32> to vector<8x32xf32>
    %23 = arith.mulf %18, %22 : vector<8x32xf32>
    %24 = vector.shape_cast %3 : vector<32xf32> to vector<1x32xf32>
    %25 = vector.broadcast %24 : vector<1x32xf32> to vector<8x32xf32>
    %26 = arith.mulf %23, %25 : vector<8x32xf32>
    %27 = vector.shape_cast %5 : vector<32xf32> to vector<1x32xf32>
    %28 = vector.broadcast %27 : vector<1x32xf32> to vector<8x32xf32>
    %29 = arith.addf %26, %28 : vector<8x32xf32>
    %c0_10 = arith.constant 0 : index
    %c0_11 = arith.constant 0 : index
    %30 = vector.load %arg5[%c0_10, %c0_11] : memref<32x96xf32, #tpu.memory_space<vmem>>, vector<32x96xf32>
    %cst_12 = arith.constant dense<0.000000e+00> : vector<8x96xf32>
    %31 = tpu.matmul %29, %30, %cst_12 {dimension_numbers = #tpu.dot_dimension_numbers<[1], [0], [0], [1], [0, 0, 1, 1], [], []>} : vector<8x32xf32>, vector<32x96xf32>, vector<8x96xf32> -> vector<8x96xf32>
    %c0_13 = arith.constant 0 : index
    %c0_14 = arith.constant 0 : index
    %32 = vector.load %arg6[%c0_13, %c0_14] : memref<1x96xf32, #tpu.memory_space<vmem>>, vector<1x96xf32>
    %33 = vector.shape_cast %32 : vector<1x96xf32> to vector<96xf32>
    %34 = vector.shape_cast %33 : vector<96xf32> to vector<1x96xf32>
    %35 = vector.broadcast %34 : vector<1x96xf32> to vector<8x96xf32>
    %36 = arith.addf %31, %35 : vector<8x96xf32>
    %37 = vector.extract_strided_slice %36 {offsets = [0, 0], sizes = [8, 32], strides = [1, 1]} : vector<8x96xf32> to vector<8x32xf32>
    %c0_15 = arith.constant 0 : index
    %c0_16 = arith.constant 0 : index
    %c0_17 = arith.constant 0 : index
    %38 = vector.load %arg7[%c0_15, %c0_16, %c0_17] : memref<1x8x32xf32, #tpu.memory_space<vmem>>, vector<1x8x32xf32>
    %39 = vector.shape_cast %38 : vector<1x8x32xf32> to vector<8x32xf32>
    %40 = vector.shape_cast %37 : vector<8x32xf32> to vector<1x8x32xf32>
    tpu.vector_store %arg7[%c0_15, %c0_16, %c0_17], %40 {strides = array<i32>} : memref<1x8x32xf32, #tpu.memory_space<vmem>>, vector<1x8x32xf32>,
    %41 = vector.extract_strided_slice %36 {offsets = [0, 32], sizes = [8, 32], strides = [1, 1]} : vector<8x96xf32> to vector<8x32xf32>
    %c0_18 = arith.constant 0 : index
    %c0_19 = arith.constant 0 : index
    %c0_20 = arith.constant 0 : index
    %42 = vector.load %arg8[%c0_18, %c0_19, %c0_20] : memref<1x8x32xf32, #tpu.memory_space<vmem>>, vector<1x8x32xf32>
    %43 = vector.shape_cast %42 : vector<1x8x32xf32> to vector<8x32xf32>
    %44 = vector.shape_cast %41 : vector<8x32xf32> to vector<1x8x32xf32>
    tpu.vector_store %arg8[%c0_18, %c0_19, %c0_20], %44 {strides = array<i32>} : memref<1x8x32xf32, #tpu.memory_space<vmem>>, vector<1x8x32xf32>,
    %45 = vector.extract_strided_slice %36 {offsets = [0, 64], sizes = [8, 32], strides = [1, 1]} : vector<8x96xf32> to vector<8x32xf32>
    %c0_21 = arith.constant 0 : index
    %c0_22 = arith.constant 0 : index
    %c0_23 = arith.constant 0 : index
    %46 = vector.load %arg9[%c0_21, %c0_22, %c0_23] : memref<1x8x32xf32, #tpu.memory_space<vmem>>, vector<1x8x32xf32>
    %47 = vector.shape_cast %46 : vector<1x8x32xf32> to vector<8x32xf32>
    %48 = vector.shape_cast %45 : vector<8x32xf32> to vector<1x8x32xf32>
    tpu.vector_store %arg9[%c0_21, %c0_22, %c0_23], %48 {strides = array<i32>} : memref<1x8x32xf32, #tpu.memory_space<vmem>>, vector<1x8x32xf32>,
    return
  }
  func.func @transform_0(%arg0: i32, %arg1: i32) -> (i32, i32, i32) {
    %c0_i32 = arith.constant 0 : i32
    %c0_i32_0 = arith.constant 0 : i32
    return %arg0, %arg1, %c0_i32 : i32, i32, i32
  }
  func.func @transform_1(%arg0: i32, %arg1: i32) -> (i32, i32) {
    %c0_i32 = arith.constant 0 : i32
    %c0_i32_0 = arith.constant 0 : i32
    %c0_i32_1 = arith.constant 0 : i32
    return %c0_i32, %c0_i32_0 : i32, i32
  }
  func.func @transform_2(%arg0: i32, %arg1: i32) -> (i32, i32) {
    %c0_i32 = arith.constant 0 : i32
    %c0_i32_0 = arith.constant 0 : i32
    %c0_i32_1 = arith.constant 0 : i32
    return %c0_i32, %c0_i32_0 : i32, i32
  }
  func.func @transform_3(%arg0: i32, %arg1: i32) -> (i32, i32) {
    %c0_i32 = arith.constant 0 : i32
    %c0_i32_0 = arith.constant 0 : i32
    %c0_i32_1 = arith.constant 0 : i32
    return %c0_i32, %c0_i32_0 : i32, i32
  }
  func.func @transform_4(%arg0: i32, %arg1: i32) -> (i32, i32) {
    %c0_i32 = arith.constant 0 : i32
    %c0_i32_0 = arith.constant 0 : i32
    %c0_i32_1 = arith.constant 0 : i32
    return %c0_i32, %c0_i32_0 : i32, i32
  }
  func.func @transform_5(%arg0: i32, %arg1: i32) -> (i32, i32, i32) {
    %c0_i32 = arith.constant 0 : i32
    %c0_i32_0 = arith.constant 0 : i32
    return %arg0, %arg1, %c0_i32 : i32, i32, i32
  }
  func.func @transform_6(%arg0: i32, %arg1: i32) -> (i32, i32, i32) {
    %c0_i32 = arith.constant 0 : i32
    %c0_i32_0 = arith.constant 0 : i32
    return %arg0, %arg1, %c0_i32 : i32, i32, i32
  }
  func.func @transform_7(%arg0: i32, %arg1: i32) -> (i32, i32, i32) {
    %c0_i32 = arith.constant 0 : i32
    %c0_i32_0 = arith.constant 0 : i32
    return %arg0, %arg1, %c0_i32 : i32, i32, i32
  }
}

module attributes {stable_mosaic.version = 11 : i64} {
  func.func @qkv_kernel(%arg0: i32, %arg1: i32, %arg2: memref<1x8x32xf32, #tpu.memory_space<vmem>>, %arg3: memref<1x32xf32, #tpu.memory_space<vmem>>, %arg4: memref<1x32xf32, #tpu.memory_space<vmem>>, %arg5: memref<32x96xf32, #tpu.memory_space<vmem>>, %arg6: memref<1x96xf32, #tpu.memory_space<vmem>>, %arg7: memref<1x8x32xf32, #tpu.memory_space<vmem>>, %arg8: memref<1x8x32xf32, #tpu.memory_space<vmem>>, %arg9: memref<1x8x32xf32, #tpu.memory_space<vmem>>) attributes {dimension_semantics = [#tpu.dimension_semantics<parallel>, #tpu.dimension_semantics<parallel>], iteration_bounds = array<i64: 2, 1>, scalar_prefetch = 0 : i64, scratch_operands = 0 : i64, tpu.core_type = #tpu.core_type<tc>, window_params = [{transform_indices = @transform_0, window_bounds = array<i64: 1, 8, 32>}, {pipeline_mode = #tpu.pipeline_mode<synchronous>, transform_indices = @transform_1, window_bounds = array<i64: 1, 32>}, {pipeline_mode = #tpu.pipeline_mode<synchronous>, transform_indices = @transform_2, window_bounds = array<i64: 1, 32>}, {pipeline_mode = #tpu.pipeline_mode<synchronous>, transform_indices = @transform_3, window_bounds = array<i64: 32, 96>}, {pipeline_mode = #tpu.pipeline_mode<synchronous>, transform_indices = @transform_4, window_bounds = array<i64: 1, 96>}, {transform_indices = @transform_5, window_bounds = array<i64: 1, 8, 32>}, {transform_indices = @transform_6, window_bounds = array<i64: 1, 8, 32>}, {transform_indices = @transform_7, window_bounds = array<i64: 1, 8, 32>}]} {
    %c0 = arith.constant 0 : index
    %c0_0 = arith.constant 0 : index
    %c0_1 = arith.constant 0 : index
    %0 = vector.load %arg2[%c0, %c0_0, %c0_1] : memref<1x8x32xf32, #tpu.memory_space<vmem>>, vector<1x8x32xf32>
    %1 = vector.shape_cast %0 : vector<1x8x32xf32> to vector<8x32xf32>
    %c0_2 = arith.constant 0 : index
    %c0_3 = arith.constant 0 : index
    %2 = vector.load %arg3[%c0_2, %c0_3] : memref<1x32xf32, #tpu.memory_space<vmem>>, vector<1x32xf32>
    %3 = vector.shape_cast %2 : vector<1x32xf32> to vector<32xf32>
    %c0_4 = arith.constant 0 : index
    %c0_5 = arith.constant 0 : index
    %4 = vector.load %arg4[%c0_4, %c0_5] : memref<1x32xf32, #tpu.memory_space<vmem>>, vector<1x32xf32>
    %5 = vector.shape_cast %4 : vector<1x32xf32> to vector<32xf32>
    %cst = arith.constant dense<0.000000e+00> : vector<8xf32>
    %6 = vector.multi_reduction <add>, %1, %cst [1] : vector<8x32xf32> to vector<8xf32>
    %7 = vector.shape_cast %6 : vector<8xf32> to vector<8x1xf32>
    %cst_6 = arith.constant 3.200000e+01 : f32
    %8 = vector.broadcast %cst_6 : f32 to vector<8x1xf32>
    %9 = arith.divf %7, %8 : vector<8x1xf32>
    %10 = vector.broadcast %9 : vector<8x1xf32> to vector<8x32xf32>
    %11 = arith.subf %1, %10 : vector<8x32xf32>
    %12 = arith.mulf %11, %11 : vector<8x32xf32>
    %cst_7 = arith.constant dense<0.000000e+00> : vector<8xf32>
    %13 = vector.multi_reduction <add>, %12, %cst_7 [1] : vector<8x32xf32> to vector<8xf32>
    %14 = vector.shape_cast %13 : vector<8xf32> to vector<8x1xf32>
    %cst_8 = arith.constant 3.200000e+01 : f32
    %15 = vector.broadcast %cst_8 : f32 to vector<8x1xf32>
    %16 = arith.divf %14, %15 : vector<8x1xf32>
    %17 = vector.broadcast %9 : vector<8x1xf32> to vector<8x32xf32>
    %18 = arith.subf %1, %17 : vector<8x32xf32>
    %cst_9 = arith.constant 9.99999974E-6 : f32
    %19 = vector.broadcast %cst_9 : f32 to vector<8x1xf32>
    %20 = arith.addf %16, %19 : vector<8x1xf32>
    %21 = math.rsqrt %20 : vector<8x1xf32>
    %22 = vector.broadcast %21 : vector<8x1xf32> to vector<8x32xf32>
    %23 = arith.mulf %18, %22 : vector<8x32xf32>
    %24 = vector.shape_cast %3 : vector<32xf32> to vector<1x32xf32>
    %25 = vector.broadcast %24 : vector<1x32xf32> to vector<8x32xf32>
    %26 = arith.mulf %23, %25 : vector<8x32xf32>
    %27 = vector.shape_cast %5 : vector<32xf32> to vector<1x32xf32>
    %28 = vector.broadcast %27 : vector<1x32xf32> to vector<8x32xf32>
    %29 = arith.addf %26, %28 : vector<8x32xf32>
    %c0_10 = arith.constant 0 : index
    %c0_11 = arith.constant 0 : index
    %30 = vector.load %arg5[%c0_10, %c0_11] : memref<32x96xf32, #tpu.memory_space<vmem>>, vector<32x96xf32>
    %cst_12 = arith.constant dense<0.000000e+00> : vector<8x96xf32>
    %31 = tpu.matmul %29, %30, %cst_12 {dimension_numbers = #tpu.dot_dimension_numbers<[1], [0], [0], [1], [0, 0, 1, 1], [], []>} : vector<8x32xf32>, vector<32x96xf32>, vector<8x96xf32> -> vector<8x96xf32>
    %c0_13 = arith.constant 0 : index
    %c0_14 = arith.constant 0 : index
    %32 = vector.load %arg6[%c0_13, %c0_14] : memref<1x96xf32, #tpu.memory_space<vmem>>, vector<1x96xf32>
    %33 = vector.shape_cast %32 : vector<1x96xf32> to vector<96xf32>
    %34 = vector.shape_cast %33 : vector<96xf32> to vector<1x96xf32>
    %35 = vector.broadcast %34 : vector<1x96xf32> to vector<8x96xf32>
    %36 = arith.addf %31, %35 : vector<8x96xf32>
    %37 = vector.extract_strided_slice %36 {offsets = [0, 0], sizes = [8, 32], strides = [1, 1]} : vector<8x96xf32> to vector<8x32xf32>
    %c0_15 = arith.constant 0 : index
    %c0_16 = arith.constant 0 : index
    %c0_17 = arith.constant 0 : index
    %38 = vector.load %arg7[%c0_15, %c0_16, %c0_17] : memref<1x8x32xf32, #tpu.memory_space<vmem>>, vector<1x8x32xf32>
    %39 = vector.shape_cast %38 : vector<1x8x32xf32> to vector<8x32xf32>
    %40 = vector.shape_cast %37 : vector<8x32xf32> to vector<1x8x32xf32>
    tpu.vector_store %arg7[%c0_15, %c0_16, %c0_17], %40 {strides = array<i32>} : memref<1x8x32xf32, #tpu.memory_space<vmem>>, vector<1x8x32xf32>,
    %41 = vector.extract_strided_slice %36 {offsets = [0, 32], sizes = [8, 32], strides = [1, 1]} : vector<8x96xf32> to vector<8x32xf32>
    %c0_18 = arith.constant 0 : index
    %c0_19 = arith.constant 0 : index
    %c0_20 = arith.constant 0 : index
    %42 = vector.load %arg8[%c0_18, %c0_19, %c0_20] : memref<1x8x32xf32, #tpu.memory_space<vmem>>, vector<1x8x32xf32>
    %43 = vector.shape_cast %42 : vector<1x8x32xf32> to vector<8x32xf32>
    %44 = vector.shape_cast %41 : vector<8x32xf32> to vector<1x8x32xf32>
    tpu.vector_store %arg8[%c0_18, %c0_19, %c0_20], %44 {strides = array<i32>} : memref<1x8x32xf32, #tpu.memory_space<vmem>>, vector<1x8x32xf32>,
    %45 = vector.extract_strided_slice %36 {offsets = [0, 64], sizes = [8, 32], strides = [1, 1]} : vector<8x96xf32> to vector<8x32xf32>
    %c0_21 = arith.constant 0 : index
    %c0_22 = arith.constant 0 : index
    %c0_23 = arith.constant 0 : index
    %46 = vector.load %arg9[%c0_21, %c0_22, %c0_23] : memref<1x8x32xf32, #tpu.memory_space<vmem>>, vector<1x8x32xf32>
    %47 = vector.shape_cast %46 : vector<1x8x32xf32> to vector<8x32xf32>
    %48 = vector.shape_cast %45 : vector<8x32xf32> to vector<1x8x32xf32>
    tpu.vector_store %arg9[%c0_21, %c0_22, %c0_23], %48 {strides = array<i32>} : memref<1x8x32xf32, #tpu.memory_space<vmem>>, vector<1x8x32xf32>,
    return
  }
  func.func @transform_0(%arg0: i32, %arg1: i32) -> (i32, i32, i32) {
    %c0_i32 = arith.constant 0 : i32
    %c0_i32_0 = arith.constant 0 : i32
    return %arg0, %arg1, %c0_i32 : i32, i32, i32
  }
  func.func @transform_1(%arg0: i32, %arg1: i32) -> (i32, i32) {
    %c0_i32 = arith.constant 0 : i32
    %c0_i32_0 = arith.constant 0 : i32
    %c0_i32_1 = arith.constant 0 : i32
    return %c0_i32, %c0_i32_0 : i32, i32
  }
  func.func @transform_2(%arg0: i32, %arg1: i32) -> (i32, i32) {
    %c0_i32 = arith.constant 0 : i32
    %c0_i32_0 = arith.constant 0 : i32
    %c0_i32_1 = arith.constant 0 : i32
    return %c0_i32, %c0_i32_0 : i32, i32
  }
  func.func @transform_3(%arg0: i32, %arg1: i32) -> (i32, i32) {
    %c0_i32 = arith.constant 0 : i32
    %c0_i32_0 = arith.constant 0 : i32
    %c0_i32_1 = arith.constant 0 : i32
    return %c0_i32, %c0_i32_0 : i32, i32
  }
  func.func @transform_4(%arg0: i32, %arg1: i32) -> (i32, i32) {
    %c0_i32 = arith.constant 0 : i32
    %c0_i32_0 = arith.constant 0 : i32
    %c0_i32_1 = arith.constant 0 : i32
    return %c0_i32, %c0_i32_0 : i32, i32
  }
  func.func @transform_5(%arg0: i32, %arg1: i32) -> (i32, i32, i32) {
    %c0_i32 = arith.constant 0 : i32
    %c0_i32_0 = arith.constant 0 : i32
    return %arg0, %arg1, %c0_i32 : i32, i32, i32
  }
  func.func @transform_6(%arg0: i32, %arg1: i32) -> (i32, i32, i32) {
    %c0_i32 = arith.constant 0 : i32
    %c0_i32_0 = arith.constant 0 : i32
    return %arg0, %arg1, %c0_i32 : i32, i32, i32
  }
  func.func @transform_7(%arg0: i32, %arg1: i32) -> (i32, i32, i32) {
    %c0_i32 = arith.constant 0 : i32
    %c0_i32_0 = arith.constant 0 : i32
    return %arg0, %arg1, %c0_i32 : i32, i32, i32
  }
}

</mosaic_0001>

<bundles_post_ra>
// kernel: tpu_custom_call.1
= control target key start
LH: loop header
LB: loop body
LE: loop exit
PB: predicated region body
PF: predicated region fallthrough
CT: control target
= control target key end

     0   :  { %s1283_s0 = inlined_call_operand.hbm [shape: f32[2,8,32], index: 0, kind: input, shape index: {}]   ;;  %s1284_s1 = inlined_call_operand.hbm [shape: f32[1,32], index: 1, kind: input, shape index: {}]   ;;  %s1285_s2 = inlined_call_operand.vmem [shape: f32[1,32], index: 2, kind: input, shape index: {}]   ;;  %s1286_s3 = inlined_call_operand.hbm [shape: f32[32,96], index: 3, kind: input, shape index: {}]   ;;  %s1287_s4 = inlined_call_operand.vmem [shape: f32[1,96], index: 4, kind: input, shape index: {}]   ;;  %s1288_s5 = inlined_call_operand.hbm [shape: f32[2,8,32], index: 5, kind: output, shape index: {0}]   ;;  %s1289_s6 = inlined_call_operand.hbm [shape: f32[2,8,32], index: 6, kind: output, shape index: {1}]   ;;  %s1290_s7 = inlined_call_operand.hbm [shape: f32[2,8,32], index: 7, kind: output, shape index: {2}]  }
   0x1   :  { %1292 = sst [smem:[#allocation16_spill]] %s1283_s0 }
   0x2   :  { %1293 = sst [smem:[#allocation17_spill]] %s1284_s1 }
   0x3   :  { %1294 = sst [smem:[#allocation18_spill]] %s1286_s3 }
   0x4   :  { %13 = vsyncpa [#allocation3], 0 }
   0x5   :  { %15 = vsyncpa [#allocation3 + $0x1], 0 }
   0x6   :  { %16 = vsyncpa [#allocation6], 0 }
   0x7   :  { %17 = vsyncpa [#allocation4], 0 }
   0x8   :  { %19 = vsyncpa [#allocation4 + $0x1], 0 }
   0x9   :  { %20 = vsyncpa [#allocation10], 0 }
   0xa   :  { %22 = vsyncpa [#allocation10 + $0x1], 0  ;;  %s1083_s24 = smov 0   ;;  %s1085_s25 = smov 0  }
   0xb   :  { %s1087_s26 = smov 0   ;;  %s1089_s27 = smov 0  }
   0xc   :  { %s1091_s28 = smov 0   ;;  %s1093_s29 = smov 0  }
   0xd LB: > { %s1114_s30 = sadd.s32 4294967295, %s1034_s29   ;;  %s1291_s8 = sadd.s32 4294967294, %s1034_s29   ;;  %s1034_s29 = sphi %s1093_s29, %s28_s29   ;;  %s1030_s28 = sphi %s1091_s28, %s1307_s28   ;;  %s1026_s27 = sphi %s1089_s27, %s1306_s27   ;;  %s1022_s26 = sphi %s1087_s26, %s1305_s26   ;;  %s1018_s25 = sphi %s1085_s25, %s1304_s25   ;;  %s1014_s24 = sphi %s1083_s24, %s1303_s24  }
   0xe   : > { %p62_p0 = scmp.ne.s32.totalorder %s1018_s25, %s1014_s24  ;;  %p63_p1 = scmp.eq.s32.totalorder %s1114_s30, 0 }
   0xf   : > { %p178_p2 = scmp.eq.s32.totalorder %s1291_s8, 1  ;;  %p671_p4 = scmp.ge.s32.totalorder %s1034_s29, 1 }
  0x10   : > { %p1124_p3 = por %p63_p1, %p62_p0  ;;  %p241_p6 = scmp.lt.s32.totalorder %s1034_s29, 3 }
  0x11   : > { %p1129_p5 = por %p178_p2, %p62_p0  ;;  %s1297_s1 = sld [smem:[#allocation17_spill]] }
  0x12   : > { %p1137_p7 = pnand %p671_p4, %p241_p6  ;;  %p674_p8 = scmp.ge.s32.totalorder %s1034_s29, 2 }
  0x13   : > { %s1036_s15 = smov [#allocation5]   ;;  %s1299_s3 = sld [smem:[#allocation18_spill]] }
  0x14   : > { %p709_p9 = pneg %p1137_p7  ;;  %s255_s16 = sshll.u32 %s1036_s15, 4  ;;  %s256_s16 = int_to_ptr.vmem [resolvable:$true] %s255_s16 }
  0x15   : > { %s1037_s20 = smov [#allocation7]   ;;  %s1038_s22 = smov 128  }
  0x16   : > { %p710_p10 = pnand %p709_p9, %p63_p1  ;;  %s269_s21 = sshll.u32 %s1037_s20, 4  ;;  %s270_s21 = int_to_ptr.vmem [resolvable:$true] %s269_s21 }
  0x17   : > { %s253_s13 = sshll.u32 %s1297_s1, 4  ;;  %s1039_s23 = smov 8   ;;  %s254_s13 = int_to_ptr.hbm [resolvable:$true] %s253_s13 }
  0x18   : > { %712 = dma.hbm_to_vmem [thread:$0]  (!%p710_p10), %s254_s13, 16, %s256_s16, [#allocation6]  }
  0x19   : > { %s267_s19 = sshll.u32 %s1299_s3, 4  ;;  %p172_p11 = scmp.eq.s32.totalorder %s1114_s30, 1  ;;  %s268_s19 = int_to_ptr.hbm [resolvable:$true] %s267_s19 }
  0x1a   : > { %715 = dma.hbm_to_vmem [thread:$0]  (!%p710_p10), %s268_s19, 512, %s270_s21, [#allocation6], %s1038_s22, %s1038_s22, %s1039_s23  }
  0x1b   : > { %s40_s11 = sadd.s32 1, %s1030_s28  ;;  %s49_s12 = sadd.s32 1, %s1022_s26 }
  0x1c   : > { %p42_p12 = scmp.ge.s32.totalorder %s40_s11, 2  ;;  %p56_p13 = scmp.ne.s32.totalorder %s1022_s26, %s1018_s25 }
  0x1d   : > { %p57_p0 = scmp.eq.s32.totalorder %s1034_s29, 0  ;;  %p732_p4 = scmp.lt.s32.totalorder %s1034_s29, 2 }
  0x1e   : > { %s1309_s11 = smov (%p42_p12, %s40_s11), 0  ;;  %p1157_p2 = por %p172_p11, %p56_p13 }
  0x1f   : > { %s44_s13 = ssub.s32 %s1030_s28, %s1309_s11  ;;  %s286_s16 = sand.u32 1, %s1022_s26  }
  0x20   : > { %p47_p6 = scmp.eq.s32.totalorder %s44_s13, 0  ;;  %p58_p9 = por %p57_p0, %p56_p13 }
  0x21   : > { %s675_s17 = sshll.u32 %s286_s16, 3  ;;  %s676_s18 = sshll.u32 %s1030_s28, 3 }
  0x22   : > { %s1167_s19 = scalar_select %p47_p6, %s1022_s26, %s49_s12  }
  0x23   : > { %s1301_s0 = sld [smem:[#allocation16_spill]]  ;;  %s290_s8 = scalar_lea.vmem [#allocation2], %s675_s17 }
  0x24   : > { %s299_s1 = sshll.u32 %s290_s8, 4  ;;  %p717_p10 = pnand %p732_p4, %p58_p9  ;;  %s300_s1 = int_to_ptr.vmem [resolvable:$true] %s299_s1 }
  0x25   : > { %s287_s3 = scalar_lea.sflag [#allocation3], %s286_s16  ;;  %s1177_s12 = sand.u32 (!%p1137_p7), 1, %s1018_s25  }
  0x26   : > { %s1180_s13 = sshll.u32 (!%p1137_p7), %s1177_s12, 3  ;;  %s311_s17 = scalar_lea.sflag (!%p1137_p7), [#allocation3], %s1177_s12 }
  0x27   : > { %308 = sbr.rel (%p1137_p7) target bundleno = 575 (0x23f), region = 40  ;;  %s314_s8 = scalar_lea.vmem (!%p1137_p7), [#allocation2], %s1180_s13 }
  0x29   : > { %s295_s22 = scalar_lea.hbm %s1301_s0, %s676_s18 }
  0x2a   : > { %s297_s23 = sshll.u32 %s295_s22, 4  ;;  %s298_s23 = int_to_ptr.hbm [resolvable:$true] %s297_s23 }
  0x2b   : > { %719 = dma.hbm_to_vmem [thread:$0]  (!%p717_p10), %s298_s23, 128, %s300_s1, %s287_s3  }
  0x2c   : > { %997 = dma.done.wait (%p1124_p3), %s311_s17, 128  }
  0x2d   : > { %999 = vsyncadd (%p1124_p3), %s311_s17, 4294967168 }
  0x2e   : > { %1001 = dma.done.wait (%p63_p1), [#allocation6], 528  }
  0x2f   : > { %1003 = vsyncadd (%p63_p1), [#allocation6], 4294966768  ;;  %vm369_vm0 = vcmask 261120   ;;  %v366_v0 = vld [vmem:[%s314_s8] sm:$0xff]  ;;  %v1040_v2 = vmov 32.0   ;;  %v407_v17 = vld [vmem:[#allocation7] sm:$0xff] }
  0x30   : > { %v370_v1 = vsel %vm369_vm0, %v366_v0, 0.0  ;;  %794 = vrcp.f32 %v1040_v2  ;;  %v410_v14 = vld [vmem:[#allocation7 + $0x18] sm:$0xff]  ;;  %v409_v15 = vld [vmem:[#allocation7 + $0x10] sm:$0xff]  ;;  %v408_v16 = vld [vmem:[#allocation7 + $0x8] sm:$0xff]  ;;  %s1199_s9 = sshll.u32 %s1026_s27, 3  ;;  %s351_s22 = scalar_lea.vmem [#allocation8], %s1180_s13 }
  0x31   : > { %371 = vadd.xlane.f32.xlu0 %v370_v1  ;;  %430 = vmatpush.msra.mxu0 %v410_v14  ;;  %v791_v27 = vld [vmem:[#allocation5] ss:$0 sm:$0xff]  ;;  %v792_v30 = vld [vmem:[%s1285_s2] ss:$0 sm:$0xff]  ;;  %s470_s21 = scalar_lea.hbm %s1288_s5, %s1199_s9  ;;  %s472_s23 = sshll.u32 %s351_s22, 4  ;;  %s473_s23 = int_to_ptr.vmem [resolvable:$true] %s472_s23 }
  0x32   : > { %v793_v33 = vld [vmem:[%s1287_s4] ss:$0 sm:$0xff]  ;;  %s474_s17 = sshll.u32 %s470_s21, 4  ;;  %s1041_s8 = smov 96   ;;  %s475_s17 = int_to_ptr.hbm [resolvable:$true] %s474_s17 }
  0x33   : > { %431 = vmatpush.msra.mxu0 %v409_v15  ;;  %s449_s27 = scalar_lea.sflag [#allocation4], %s1177_s12  ;;  %s902_s1 = sshra.s32 %s475_s17, 4  ;;  %s903_s1 = int_to_ptr.hbm [resolvable:$true] %s902_s1 }
  0x34   : > { %s904_s3 = scalar_lea.hbm %s903_s1, 8  ;;  %s908_s18 = scalar_lea.hbm %s1288_s5, 16 }
  0x35   : > { %432 = vmatpush.msra.mxu0 %v408_v16  ;;  %p905_p1 = scmp.ne.s32.totalorder %s903_s1, %s904_s3  ;;  %p909_p11 = scmp.lt.s32.totalorder %s903_s1, %s1288_s5 }
  0x36   : > { %v795_v3 = vpop.eup %794  ;;  %p910_p12 = scmp.lt.s32.totalorder %s908_s18, %s904_s3 }
  0x37   : > { %v374_v4 = vmul.f32 32.0, %v795_v3  ;;  %vm378_vm1 = vweird.f32 %v795_v3  ;;  %433 = vmatpush.msra.mxu0 %v407_v17  ;;  %p906_p3 = pnand %p905_p1, %p1157_p2 }
  0x38   : > { %p911_p13 = por %p910_p12, %p909_p11 }
  0x39   : > { %v375_v5 = vsub.f32 1.0, %v374_v4  ;;  %p907_p7 = pneg %p906_p3 }
  0x3b   : > { %v376_v6 = vmul.f32 %v795_v3, %v375_v5  ;;  %p912_p0 = pnand %p911_p13, %p907_p7 }
  0x3d   : > { %v377_v7 = vadd.f32 %v795_v3, %v376_v6 }
  0x3f   : > { %v379_v8 = vsel %vm378_vm1, %v795_v3, %v377_v7 }
  0xa4   : > { %v372_v9 = vpop.xlane.xlu0 %371 }
  0xa5   : > { %v380_v10 = vmul.f32 %v379_v8, %v372_v9 }
  0xa7   : > { %v381_v11 = vsub.f32 %v366_v0, %v380_v10 }
  0xa9   : > { %v382_v12 = vmul.f32 %v381_v11, %v381_v11 }
  0xab   : > { %v383_v13 = vsel %vm369_vm0, %v382_v12, 0.0 }
  0xac   : > { %384 = vadd.xlane.f32.xlu0 %v383_v13 }
 0x11f   : > { %v385_v18 = vpop.xlane.xlu0 %384 }
 0x120   : > { %v386_v19 = vmul.f32 %v385_v18, %v379_v8 }
 0x122   : > { %v387_v20 = vadd.f32 1e-05, %v386_v19 }
 0x124   : > { %796 = vrsqrt.f32 %v387_v20  ;;  %vm394_vm3 = vweird.f32 %v387_v20 }
 0x12a   : > { %v797_v21 = vpop.eup %796 }
 0x12b   : > { %v389_v22 = vmul.f32 %v797_v21, %v387_v20  ;;  %vm395_vm2 = vweird.f32 %v797_v21 }
 0x12c   : > { %vm396_vm4 = vmor %vm394_vm3, %vm395_vm2 }
 0x12d   : > { %v390_v23 = vmul.f32 %v797_v21, %v389_v22 }
 0x12f   : > { %v391_v24 = vmul.f32 0.5, %v390_v23 }
 0x131   : > { %v392_v25 = vsub.f32 1.5, %v391_v24 }
 0x133   : > { %v393_v26 = vmul.f32 %v797_v21, %v392_v25 }
 0x135   : > { %v397_v28 = vsel %vm396_vm4, %v797_v21, %v393_v26 }
 0x136   : > { %v398_v29 = vmul.f32 %v397_v28, %v381_v11 }
 0x138   : > { %v402_v31 = vmul.f32 %v791_v27, %v398_v29 }
 0x13a   : > { %v406_v32 = vadd.f32 %v792_v30, %v402_v31 }
 0x13c   : > { %684 = vmatmul.msk.f32.vlgmr.msra.gmra.mxu0 %vm369_vm0, %v406_v32 }
 0x1b9   : > { %v435_v34 = vpop.f32.mrf.mxu0 }
 0x1ba   : > { %v436_v35 = vadd.f32 %v793_v33, %v435_v34 }
 0x1bc   : > { %440 = vrot.lane.b32.xlu1 %v436_v35, %s1041_s8  ;;  %438 = vst.msk [vmem:[%s351_s22] sm:$0xff] %vm369_vm0, %v436_v35 }
 0x1bd   : > { %915 = shalt.err (!%p912_p0)
}
 0x1be   : > { %703 = dma.vmem_to_hbm [thread:$0]  (%p1157_p2), %s473_s23, 128, %s475_s17, %s449_s27  }
 0x1bf   : > { %s1042_s12 = smov 64   ;;  %s485_s14 = scalar_lea.hbm %s1289_s6, %s1199_s9 }
 0x1c0   : > { %s453_s16 = sand.u32 1, %s1114_s30   ;;  %s358_s1 = scalar_lea.vmem [#allocation9], %s1180_s13 }
 0x1c1   : > { %s487_s3 = sshll.u32 %s358_s1, 4  ;;  %s489_s18 = sshll.u32 %s485_s14, 4  ;;  %s488_s3 = int_to_ptr.vmem [resolvable:$true] %s487_s3  ;;  %s490_s18 = int_to_ptr.hbm [resolvable:$true] %s489_s18 }
 0x1c2   : > { %s500_s23 = scalar_lea.hbm %s1290_s7, %s1199_s9  ;;  %s1232_s17 = scalar_lea.sflag [#allocation10], %s453_s16 }
 0x1c3   : > { %s930_s27 = sshra.s32 %s490_s18, 4  ;;  %s936_s8 = scalar_lea.hbm %s1289_s6, 16  ;;  %s931_s27 = int_to_ptr.hbm [resolvable:$true] %s930_s27 }
 0x1c4   : > { %444 = vrot.lane.b32.xlu1 %v436_v35, %s1042_s12  ;;  %s932_s12 = scalar_lea.hbm %s931_s27, 8  ;;  %p937_p10 = scmp.lt.s32.totalorder %s931_s27, %s1289_s6 }
 0x1c5   : > { %p933_p4 = scmp.ne.s32.totalorder %s931_s27, %s932_s12  ;;  %p938_p1 = scmp.lt.s32.totalorder %s936_s8, %s932_s12 }
 0x1c7   : > { %p934_p6 = pnand %p933_p4, %p1157_p2  ;;  %p939_p3 = por %p938_p1, %p937_p10 }
 0x1c9   : > { %p935_p9 = pneg %p934_p6 }
 0x1cb   : > { %p940_p7 = pnand %p939_p3, %p935_p9 }
 0x22e   : > { %v441_v36 = vpop.permute.xlu1 %440 }
 0x22f   : > { %443 = vst.msk [vmem:[%s358_s1] sm:$0xff] %vm369_vm0, %v441_v36 }
 0x230   : > { %943 = shalt.err (!%p940_p7)
}
 0x231   : > { %704 = dma.vmem_to_hbm [thread:$0]  (%p1157_p2), %s488_s3, 128, %s490_s18, %s1232_s17  }
 0x232   : > { %s365_s9 = scalar_lea.vmem [#allocation11], %s1180_s13  ;;  %s504_s1 = sshll.u32 %s500_s23, 4  ;;  %s505_s1 = int_to_ptr.hbm [resolvable:$true] %s504_s1 }
 0x233   : > { %s502_s16 = sshll.u32 %s365_s9, 4  ;;  %s958_s0 = sshra.s32 %s505_s1, 4  ;;  %s503_s16 = int_to_ptr.vmem [resolvable:$true] %s502_s16  ;;  %s959_s0 = int_to_ptr.hbm [resolvable:$true] %s958_s0 }
 0x234   : > { %s960_s20 = scalar_lea.hbm %s959_s0, 8  ;;  %s964_s12 = scalar_lea.hbm %s1290_s7, 16 }
 0x235   : > { %p961_p11 = scmp.ne.s32.totalorder %s959_s0, %s960_s20  ;;  %p965_p0 = scmp.lt.s32.totalorder %s959_s0, %s1290_s7 }
 0x236   : > { %v445_v37 = vpop.permute.xlu1 %444  ;;  %p966_p4 = scmp.lt.s32.totalorder %s964_s12, %s960_s20 }
 0x237   : > { %447 = vst.msk [vmem:[%s365_s9] sm:$0xff] %vm369_vm0, %v445_v37  ;;  %p962_p12 = pnand %p961_p11, %p1157_p2 }
 0x238   : > { %p967_p6 = por %p966_p4, %p965_p0 }
 0x239   : > { %p963_p13 = pneg %p962_p12 }
 0x23b   : > { %p968_p9 = pnand %p967_p6, %p963_p13 }
 0x23d   : > { %971 = shalt.err (!%p968_p9)
}
 0x23e   : > { %705 = dma.vmem_to_hbm [thread:$0]  (%p1157_p2), %s503_s16, 128, %s505_s1, %s1232_s17  }
 0x23f PF: > { %s516_s18 = sand.u32 1, %s1014_s24   ;;  %p721_p10 = pnand %p674_p8, %p1129_p5 }
 0x240   : > { %s517_s23 = scalar_lea.sflag [#allocation4], %s516_s18 }
 0x241   : > { %p722_p1 = pneg %p721_p10 }
 0x243   : > { %1005 = dma.done.wait (%p722_p1), %s517_s23, 128  }
 0x244   : > { %1007 = vsyncadd (%p722_p1), %s517_s23, 4294967168  ;;  %s1302_s30 = sadd.s32 4294967294, %s1034_s29  }
 0x245   : > { %s526_s22 = sand.u32 1, %s1302_s30  }
 0x246   : > { %s527_s8 = scalar_lea.sflag [#allocation10], %s526_s22 }
 0x247   : > { %1009 = dma.done.wait (%p722_p1), %s527_s8, 256  }
 0x248   : > { %1011 = vsyncadd (%p722_p1), %s527_s8, 4294967040  ;;  %s28_s29 = sadd.s32 1, %s1034_s29   ;;  %s1303_s24 = smov %s1018_s25 }
 0x249   : > { %p25_p2 = scmp.ge.s32.totalorder %s28_s29, 4   ;;  %s1304_s25 = smov %s1022_s26 }
 0x24a   : > { %s1305_s26 = smov %s1167_s19  ;;  %s1306_s27 = smov %s1030_s28 }
 0x24b   : > { %s1307_s28 = smov %s1309_s11  ;;  %27 = sbr.rel (!%p25_p2) target bundleno = 13 (0xd), region = 125 }
 0x250   :  { %543 = vsyncpa [#allocation3], 1 }
 0x251   :  { %545 = vsyncpa [#allocation3 + $0x1], 1 }
 0x252   :  { %546 = vsyncpa [#allocation6], 1 }
 0x253   :  { %547 = vsyncpa [#allocation4], 1 }
 0x254   :  { %549 = vsyncpa [#allocation4 + $0x1], 1 }
 0x255   :  { %550 = vsyncpa [#allocation10], 1 }
 0x256   :  { %552 = vsyncpa [#allocation10 + $0x1], 1 }

// kernel: tpu_custom_call.1
= control target key start
LH: loop header
LB: loop body
LE: loop exit
PB: predicated region body
PF: predicated region fallthrough
CT: control target
= control target key end

     0   :  { %s1283_s0 = inlined_call_operand.hbm [shape: f32[2,8,32], index: 0, kind: input, shape index: {}]   ;;  %s1284_s1 = inlined_call_operand.hbm [shape: f32[1,32], index: 1, kind: input, shape index: {}]   ;;  %s1285_s2 = inlined_call_operand.vmem [shape: f32[1,32], index: 2, kind: input, shape index: {}]   ;;  %s1286_s3 = inlined_call_operand.hbm [shape: f32[32,96], index: 3, kind: input, shape index: {}]   ;;  %s1287_s4 = inlined_call_operand.vmem [shape: f32[1,96], index: 4, kind: input, shape index: {}]   ;;  %s1288_s5 = inlined_call_operand.hbm [shape: f32[2,8,32], index: 5, kind: output, shape index: {0}]   ;;  %s1289_s6 = inlined_call_operand.hbm [shape: f32[2,8,32], index: 6, kind: output, shape index: {1}]   ;;  %s1290_s7 = inlined_call_operand.hbm [shape: f32[2,8,32], index: 7, kind: output, shape index: {2}]  }
   0x1   :  { %1292 = sst [smem:[#allocation16_spill]] %s1283_s0 }
   0x2   :  { %1293 = sst [smem:[#allocation17_spill]] %s1284_s1 }
   0x3   :  { %1294 = sst [smem:[#allocation18_spill]] %s1286_s3 }
   0x4   :  { %13 = vsyncpa [#allocation3], 0 }
   0x5   :  { %15 = vsyncpa [#allocation3 + $0x1], 0 }
   0x6   :  { %16 = vsyncpa [#allocation6], 0 }
   0x7   :  { %17 = vsyncpa [#allocation4], 0 }
   0x8   :  { %19 = vsyncpa [#allocation4 + $0x1], 0 }
   0x9   :  { %20 = vsyncpa [#allocation10], 0 }
   0xa   :  { %22 = vsyncpa [#allocation10 + $0x1], 0  ;;  %s1083_s24 = smov 0   ;;  %s1085_s25 = smov 0  }
   0xb   :  { %s1087_s26 = smov 0   ;;  %s1089_s27 = smov 0  }
   0xc   :  { %s1091_s28 = smov 0   ;;  %s1093_s29 = smov 0  }
   0xd LB: > { %s1114_s30 = sadd.s32 4294967295, %s1034_s29   ;;  %s1291_s8 = sadd.s32 4294967294, %s1034_s29   ;;  %s1034_s29 = sphi %s1093_s29, %s28_s29   ;;  %s1030_s28 = sphi %s1091_s28, %s1307_s28   ;;  %s1026_s27 = sphi %s1089_s27, %s1306_s27   ;;  %s1022_s26 = sphi %s1087_s26, %s1305_s26   ;;  %s1018_s25 = sphi %s1085_s25, %s1304_s25   ;;  %s1014_s24 = sphi %s1083_s24, %s1303_s24  }
   0xe   : > { %p62_p0 = scmp.ne.s32.totalorder %s1018_s25, %s1014_s24  ;;  %p63_p1 = scmp.eq.s32.totalorder %s1114_s30, 0 }
   0xf   : > { %p178_p2 = scmp.eq.s32.totalorder %s1291_s8, 1  ;;  %p671_p4 = scmp.ge.s32.totalorder %s1034_s29, 1 }
  0x10   : > { %p1124_p3 = por %p63_p1, %p62_p0  ;;  %p241_p6 = scmp.lt.s32.totalorder %s1034_s29, 3 }
  0x11   : > { %p1129_p5 = por %p178_p2, %p62_p0  ;;  %s1297_s1 = sld [smem:[#allocation17_spill]] }
  0x12   : > { %p1137_p7 = pnand %p671_p4, %p241_p6  ;;  %p674_p8 = scmp.ge.s32.totalorder %s1034_s29, 2 }
  0x13   : > { %s1036_s15 = smov [#allocation5]   ;;  %s1299_s3 = sld [smem:[#allocation18_spill]] }
  0x14   : > { %p709_p9 = pneg %p1137_p7  ;;  %s255_s16 = sshll.u32 %s1036_s15, 4  ;;  %s256_s16 = int_to_ptr.vmem [resolvable:$true] %s255_s16 }
  0x15   : > { %s1037_s20 = smov [#allocation7]   ;;  %s1038_s22 = smov 128  }
  0x16   : > { %p710_p10 = pnand %p709_p9, %p63_p1  ;;  %s269_s21 = sshll.u32 %s1037_s20, 4  ;;  %s270_s21 = int_to_ptr.vmem [resolvable:$true] %s269_s21 }
  0x17   : > { %s253_s13 = sshll.u32 %s1297_s1, 4  ;;  %s1039_s23 = smov 8   ;;  %s254_s13 = int_to_ptr.hbm [resolvable:$true] %s253_s13 }
  0x18   : > { %712 = dma.hbm_to_vmem [thread:$0]  (!%p710_p10), %s254_s13, 16, %s256_s16, [#allocation6]  }
  0x19   : > { %s267_s19 = sshll.u32 %s1299_s3, 4  ;;  %p172_p11 = scmp.eq.s32.totalorder %s1114_s30, 1  ;;  %s268_s19 = int_to_ptr.hbm [resolvable:$true] %s267_s19 }
  0x1a   : > { %715 = dma.hbm_to_vmem [thread:$0]  (!%p710_p10), %s268_s19, 512, %s270_s21, [#allocation6], %s1038_s22, %s1038_s22, %s1039_s23  }
  0x1b   : > { %s40_s11 = sadd.s32 1, %s1030_s28  ;;  %s49_s12 = sadd.s32 1, %s1022_s26 }
  0x1c   : > { %p42_p12 = scmp.ge.s32.totalorder %s40_s11, 2  ;;  %p56_p13 = scmp.ne.s32.totalorder %s1022_s26, %s1018_s25 }
  0x1d   : > { %p57_p0 = scmp.eq.s32.totalorder %s1034_s29, 0  ;;  %p732_p4 = scmp.lt.s32.totalorder %s1034_s29, 2 }
  0x1e   : > { %s1309_s11 = smov (%p42_p12, %s40_s11), 0  ;;  %p1157_p2 = por %p172_p11, %p56_p13 }
  0x1f   : > { %s44_s13 = ssub.s32 %s1030_s28, %s1309_s11  ;;  %s286_s16 = sand.u32 1, %s1022_s26  }
  0x20   : > { %p47_p6 = scmp.eq.s32.totalorder %s44_s13, 0  ;;  %p58_p9 = por %p57_p0, %p56_p13 }
  0x21   : > { %s675_s17 = sshll.u32 %s286_s16, 3  ;;  %s676_s18 = sshll.u32 %s1030_s28, 3 }
  0x22   : > { %s1167_s19 = scalar_select %p47_p6, %s1022_s26, %s49_s12  }
  0x23   : > { %s1301_s0 = sld [smem:[#allocation16_spill]]  ;;  %s290_s8 = scalar_lea.vmem [#allocation2], %s675_s17 }
  0x24   : > { %s299_s1 = sshll.u32 %s290_s8, 4  ;;  %p717_p10 = pnand %p732_p4, %p58_p9  ;;  %s300_s1 = int_to_ptr.vmem [resolvable:$true] %s299_s1 }
  0x25   : > { %s287_s3 = scalar_lea.sflag [#allocation3], %s286_s16  ;;  %s1177_s12 = sand.u32 (!%p1137_p7), 1, %s1018_s25  }
  0x26   : > { %s1180_s13 = sshll.u32 (!%p1137_p7), %s1177_s12, 3  ;;  %s311_s17 = scalar_lea.sflag (!%p1137_p7), [#allocation3], %s1177_s12 }
  0x27   : > { %308 = sbr.rel (%p1137_p7) target bundleno = 575 (0x23f), region = 40  ;;  %s314_s8 = scalar_lea.vmem (!%p1137_p7), [#allocation2], %s1180_s13 }
  0x29   : > { %s295_s22 = scalar_lea.hbm %s1301_s0, %s676_s18 }
  0x2a   : > { %s297_s23 = sshll.u32 %s295_s22, 4  ;;  %s298_s23 = int_to_ptr.hbm [resolvable:$true] %s297_s23 }
  0x2b   : > { %719 = dma.hbm_to_vmem [thread:$0]  (!%p717_p10), %s298_s23, 128, %s300_s1, %s287_s3  }
  0x2c   : > { %997 = dma.done.wait (%p1124_p3), %s311_s17, 128  }
  0x2d   : > { %999 = vsyncadd (%p1124_p3), %s311_s17, 4294967168 }
  0x2e   : > { %1001 = dma.done.wait (%p63_p1), [#allocation6], 528  }
  0x2f   : > { %1003 = vsyncadd (%p63_p1), [#allocation6], 4294966768  ;;  %vm369_vm0 = vcmask 261120   ;;  %v366_v0 = vld [vmem:[%s314_s8] sm:$0xff]  ;;  %v1040_v2 = vmov 32.0   ;;  %v407_v17 = vld [vmem:[#allocation7] sm:$0xff] }
  0x30   : > { %v370_v1 = vsel %vm369_vm0, %v366_v0, 0.0  ;;  %794 = vrcp.f32 %v1040_v2  ;;  %v410_v14 = vld [vmem:[#allocation7 + $0x18] sm:$0xff]  ;;  %v409_v15 = vld [vmem:[#allocation7 + $0x10] sm:$0xff]  ;;  %v408_v16 = vld [vmem:[#allocation7 + $0x8] sm:$0xff]  ;;  %s1199_s9 = sshll.u32 %s1026_s27, 3  ;;  %s351_s22 = scalar_lea.vmem [#allocation8], %s1180_s13 }
  0x31   : > { %371 = vadd.xlane.f32.xlu0 %v370_v1  ;;  %430 = vmatpush.msra.mxu0 %v410_v14  ;;  %v791_v27 = vld [vmem:[#allocation5] ss:$0 sm:$0xff]  ;;  %v792_v30 = vld [vmem:[%s1285_s2] ss:$0 sm:$0xff]  ;;  %s470_s21 = scalar_lea.hbm %s1288_s5, %s1199_s9  ;;  %s472_s23 = sshll.u32 %s351_s22, 4  ;;  %s473_s23 = int_to_ptr.vmem [resolvable:$true] %s472_s23 }
  0x32   : > { %v793_v33 = vld [vmem:[%s1287_s4] ss:$0 sm:$0xff]  ;;  %s474_s17 = sshll.u32 %s470_s21, 4  ;;  %s1041_s8 = smov 96   ;;  %s475_s17 = int_to_ptr.hbm [resolvable:$true] %s474_s17 }
  0x33   : > { %431 = vmatpush.msra.mxu0 %v409_v15  ;;  %s449_s27 = scalar_lea.sflag [#allocation4], %s1177_s12  ;;  %s902_s1 = sshra.s32 %s475_s17, 4  ;;  %s903_s1 = int_to_ptr.hbm [resolvable:$true] %s902_s1 }
  0x34   : > { %s904_s3 = scalar_lea.hbm %s903_s1, 8  ;;  %s908_s18 = scalar_lea.hbm %s1288_s5, 16 }
  0x35   : > { %432 = vmatpush.msra.mxu0 %v408_v16  ;;  %p905_p1 = scmp.ne.s32.totalorder %s903_s1, %s904_s3  ;;  %p909_p11 = scmp.lt.s32.totalorder %s903_s1, %s1288_s5 }
  0x36   : > { %v795_v3 = vpop.eup %794  ;;  %p910_p12 = scmp.lt.s32.totalorder %s908_s18, %s904_s3 }
  0x37   : > { %v374_v4 = vmul.f32 32.0, %v795_v3  ;;  %vm378_vm1 = vweird.f32 %v795_v3  ;;  %433 = vmatpush.msra.mxu0 %v407_v17  ;;  %p906_p3 = pnand %p905_p1, %p1157_p2 }
  0x38   : > { %p911_p13 = por %p910_p12, %p909_p11 }
  0x39   : > { %v375_v5 = vsub.f32 1.0, %v374_v4  ;;  %p907_p7 = pneg %p906_p3 }
  0x3b   : > { %v376_v6 = vmul.f32 %v795_v3, %v375_v5  ;;  %p912_p0 = pnand %p911_p13, %p907_p7 }
  0x3d   : > { %v377_v7 = vadd.f32 %v795_v3, %v376_v6 }
  0x3f   : > { %v379_v8 = vsel %vm378_vm1, %v795_v3, %v377_v7 }
  0xa4   : > { %v372_v9 = vpop.xlane.xlu0 %371 }
  0xa5   : > { %v380_v10 = vmul.f32 %v379_v8, %v372_v9 }
  0xa7   : > { %v381_v11 = vsub.f32 %v366_v0, %v380_v10 }
  0xa9   : > { %v382_v12 = vmul.f32 %v381_v11, %v381_v11 }
  0xab   : > { %v383_v13 = vsel %vm369_vm0, %v382_v12, 0.0 }
  0xac   : > { %384 = vadd.xlane.f32.xlu0 %v383_v13 }
 0x11f   : > { %v385_v18 = vpop.xlane.xlu0 %384 }
 0x120   : > { %v386_v19 = vmul.f32 %v385_v18, %v379_v8 }
 0x122   : > { %v387_v20 = vadd.f32 1e-05, %v386_v19 }
 0x124   : > { %796 = vrsqrt.f32 %v387_v20  ;;  %vm394_vm3 = vweird.f32 %v387_v20 }
 0x12a   : > { %v797_v21 = vpop.eup %796 }
 0x12b   : > { %v389_v22 = vmul.f32 %v797_v21, %v387_v20  ;;  %vm395_vm2 = vweird.f32 %v797_v21 }
 0x12c   : > { %vm396_vm4 = vmor %vm394_vm3, %vm395_vm2 }
 0x12d   : > { %v390_v23 = vmul.f32 %v797_v21, %v389_v22 }
 0x12f   : > { %v391_v24 = vmul.f32 0.5, %v390_v23 }
 0x131   : > { %v392_v25 = vsub.f32 1.5, %v391_v24 }
 0x133   : > { %v393_v26 = vmul.f32 %v797_v21, %v392_v25 }
 0x135   : > { %v397_v28 = vsel %vm396_vm4, %v797_v21, %v393_v26 }
 0x136   : > { %v398_v29 = vmul.f32 %v397_v28, %v381_v11 }
 0x138   : > { %v402_v31 = vmul.f32 %v791_v27, %v398_v29 }
 0x13a   : > { %v406_v32 = vadd.f32 %v792_v30, %v402_v31 }
 0x13c   : > { %684 = vmatmul.msk.f32.vlgmr.msra.gmra.mxu0 %vm369_vm0, %v406_v32 }
 0x1b9   : > { %v435_v34 = vpop.f32.mrf.mxu0 }
 0x1ba   : > { %v436_v35 = vadd.f32 %v793_v33, %v435_v34 }
 0x1bc   : > { %440 = vrot.lane.b32.xlu1 %v436_v35, %s1041_s8  ;;  %438 = vst.msk [vmem:[%s351_s22] sm:$0xff] %vm369_vm0, %v436_v35 }
 0x1bd   : > { %915 = shalt.err (!%p912_p0)
}
 0x1be   : > { %703 = dma.vmem_to_hbm [thread:$0]  (%p1157_p2), %s473_s23, 128, %s475_s17, %s449_s27  }
 0x1bf   : > { %s1042_s12 = smov 64   ;;  %s485_s14 = scalar_lea.hbm %s1289_s6, %s1199_s9 }
 0x1c0   : > { %s453_s16 = sand.u32 1, %s1114_s30   ;;  %s358_s1 = scalar_lea.vmem [#allocation9], %s1180_s13 }
 0x1c1   : > { %s487_s3 = sshll.u32 %s358_s1, 4  ;;  %s489_s18 = sshll.u32 %s485_s14, 4  ;;  %s488_s3 = int_to_ptr.vmem [resolvable:$true] %s487_s3  ;;  %s490_s18 = int_to_ptr.hbm [resolvable:$true] %s489_s18 }
 0x1c2   : > { %s500_s23 = scalar_lea.hbm %s1290_s7, %s1199_s9  ;;  %s1232_s17 = scalar_lea.sflag [#allocation10], %s453_s16 }
 0x1c3   : > { %s930_s27 = sshra.s32 %s490_s18, 4  ;;  %s936_s8 = scalar_lea.hbm %s1289_s6, 16  ;;  %s931_s27 = int_to_ptr.hbm [resolvable:$true] %s930_s27 }
 0x1c4   : > { %444 = vrot.lane.b32.xlu1 %v436_v35, %s1042_s12  ;;  %s932_s12 = scalar_lea.hbm %s931_s27, 8  ;;  %p937_p10 = scmp.lt.s32.totalorder %s931_s27, %s1289_s6 }
 0x1c5   : > { %p933_p4 = scmp.ne.s32.totalorder %s931_s27, %s932_s12  ;;  %p938_p1 = scmp.lt.s32.totalorder %s936_s8, %s932_s12 }
 0x1c7   : > { %p934_p6 = pnand %p933_p4, %p1157_p2  ;;  %p939_p3 = por %p938_p1, %p937_p10 }
 0x1c9   : > { %p935_p9 = pneg %p934_p6 }
 0x1cb   : > { %p940_p7 = pnand %p939_p3, %p935_p9 }
 0x22e   : > { %v441_v36 = vpop.permute.xlu1 %440 }
 0x22f   : > { %443 = vst.msk [vmem:[%s358_s1] sm:$0xff] %vm369_vm0, %v441_v36 }
 0x230   : > { %943 = shalt.err (!%p940_p7)
}
 0x231   : > { %704 = dma.vmem_to_hbm [thread:$0]  (%p1157_p2), %s488_s3, 128, %s490_s18, %s1232_s17  }
 0x232   : > { %s365_s9 = scalar_lea.vmem [#allocation11], %s1180_s13  ;;  %s504_s1 = sshll.u32 %s500_s23, 4  ;;  %s505_s1 = int_to_ptr.hbm [resolvable:$true] %s504_s1 }
 0x233   : > { %s502_s16 = sshll.u32 %s365_s9, 4  ;;  %s958_s0 = sshra.s32 %s505_s1, 4  ;;  %s503_s16 = int_to_ptr.vmem [resolvable:$true] %s502_s16  ;;  %s959_s0 = int_to_ptr.hbm [resolvable:$true] %s958_s0 }
 0x234   : > { %s960_s20 = scalar_lea.hbm %s959_s0, 8  ;;  %s964_s12 = scalar_lea.hbm %s1290_s7, 16 }
 0x235   : > { %p961_p11 = scmp.ne.s32.totalorder %s959_s0, %s960_s20  ;;  %p965_p0 = scmp.lt.s32.totalorder %s959_s0, %s1290_s7 }
 0x236   : > { %v445_v37 = vpop.permute.xlu1 %444  ;;  %p966_p4 = scmp.lt.s32.totalorder %s964_s12, %s960_s20 }
 0x237   : > { %447 = vst.msk [vmem:[%s365_s9] sm:$0xff] %vm369_vm0, %v445_v37  ;;  %p962_p12 = pnand %p961_p11, %p1157_p2 }
 0x238   : > { %p967_p6 = por %p966_p4, %p965_p0 }
 0x239   : > { %p963_p13 = pneg %p962_p12 }
 0x23b   : > { %p968_p9 = pnand %p967_p6, %p963_p13 }
 0x23d   : > { %971 = shalt.err (!%p968_p9)
}
 0x23e   : > { %705 = dma.vmem_to_hbm [thread:$0]  (%p1157_p2), %s503_s16, 128, %s505_s1, %s1232_s17  }
 0x23f PF: > { %s516_s18 = sand.u32 1, %s1014_s24   ;;  %p721_p10 = pnand %p674_p8, %p1129_p5 }
 0x240   : > { %s517_s23 = scalar_lea.sflag [#allocation4], %s516_s18 }
 0x241   : > { %p722_p1 = pneg %p721_p10 }
 0x243   : > { %1005 = dma.done.wait (%p722_p1), %s517_s23, 128  }
 0x244   : > { %1007 = vsyncadd (%p722_p1), %s517_s23, 4294967168  ;;  %s1302_s30 = sadd.s32 4294967294, %s1034_s29  }
 0x245   : > { %s526_s22 = sand.u32 1, %s1302_s30  }
 0x246   : > { %s527_s8 = scalar_lea.sflag [#allocation10], %s526_s22 }
 0x247   : > { %1009 = dma.done.wait (%p722_p1), %s527_s8, 256  }
 0x248   : > { %1011 = vsyncadd (%p722_p1), %s527_s8, 4294967040  ;;  %s28_s29 = sadd.s32 1, %s1034_s29   ;;  %s1303_s24 = smov %s1018_s25 }
 0x249   : > { %p25_p2 = scmp.ge.s32.totalorder %s28_s29, 4   ;;  %s1304_s25 = smov %s1022_s26 }
 0x24a   : > { %s1305_s26 = smov %s1167_s19  ;;  %s1306_s27 = smov %s1030_s28 }
 0x24b   : > { %s1307_s28 = smov %s1309_s11  ;;  %27 = sbr.rel (!%p25_p2) target bundleno = 13 (0xd), region = 125 }
 0x250   :  { %543 = vsyncpa [#allocation3], 1 }
 0x251   :  { %545 = vsyncpa [#allocation3 + $0x1], 1 }
 0x252   :  { %546 = vsyncpa [#allocation6], 1 }
 0x253   :  { %547 = vsyncpa [#allocation4], 1 }
 0x254   :  { %549 = vsyncpa [#allocation4 + $0x1], 1 }
 0x255   :  { %550 = vsyncpa [#allocation10], 1 }
 0x256   :  { %552 = vsyncpa [#allocation10 + $0x1], 1 }

</bundles_post_ra>
